<compile_context>
chip_gen: v7x
topology: tpu7x:2x2x1
jax: 0.10.0
libtpu: 0.0.40
codegen_flags: <defaults>
</compile_context>

<pallas_src>
import functools

import jax
import jax.numpy as jnp
from jax.experimental import pallas as pl
from jax.experimental.pallas import tpu as pltpu

IN_FEATURES = 32        # module-level `shape` in the original file is a placeholder (0)
H1, H2, NUM_CLASSES = 20, 10, 3
PAD = 128               # lane-aligned padded width for hidden/logit dims
OUT_PAD = 8             # narrow lane-width for the output slab (>= NUM_CLASSES)


def _round_up(a, m):
    return ((a + m - 1) // m) * m


def ann_kernel(x_ref, w1_ref, w23_ref, b_ref, out_ref, *, out_width):
    """Fused MLP forward: 3 bf16 matmuls (f32 acc) + bias + relu + softmax."""
    x = x_ref[...]                                   # (bt, D) bf16
    b = b_ref[...]                                   # (3, PAD) f32: rows = b1, b2, b3(masked)

    # h1 = relu(x @ W1 + b1)   -- padded lanes >= H1 stay exactly 0 (zero-padded W1/b1)
    h1 = jnp.dot(x, w1_ref[...], preferred_element_type=jnp.float32) + b[0:1, :]
    h1 = jnp.maximum(h1, 0.0)                        # (bt, PAD) f32

    # Dropout(p=0.5): identity at inference time.
    # TODO(synk): training-mode dropout (stochastic mask via pltpu.prng_*) not implemented.

    # h2 = relu(h1 @ W2 + b2)  -- zero-padded W2 rows/cols keep padded lanes at 0
    h2 = jnp.dot(h1.astype(jnp.bfloat16), w23_ref[0],
                 preferred_element_type=jnp.float32) + b[1:2, :]
    h2 = jnp.maximum(h2, 0.0)                        # (bt, PAD) f32

    # logits = h2 @ W3 + b3.  Padded W3 columns are zero and b3's padded lanes
    # carry -1e30 (mask baked into the bias), so exp() of padded lanes is 0.
    logits = jnp.dot(h2.astype(jnp.bfloat16), w23_ref[1],
                     preferred_element_type=jnp.float32) + b[2:3, :]

    m = jnp.max(logits, axis=1, keepdims=True)
    e = jnp.exp(logits - m)
    denom = jnp.sum(e, axis=1, keepdims=True)
    probs = e / denom                                # exact division: rows sum to 1

    out_ref[...] = probs[:, :out_width]              # (bt, OUT_PAD) f32


def pack_params(w1, b1, w2, b2, w3, b3):
    """One-time packing: lane-aligned, bf16 weights, consolidated operands.

    Call once at init / parameter-load time; reuse the result for every forward.
    """
    f32, bf16 = jnp.float32, jnp.bfloat16
    d_in = w1.shape[0]

    w1p = jnp.zeros((d_in, PAD), f32).at[:, :H1].set(w1.astype(f32)).astype(bf16)
    w2p = jnp.zeros((PAD, PAD), f32).at[:H1, :H2].set(w2.astype(f32))
    w3p = jnp.zeros((PAD, PAD), f32).at[:H2, :NUM_CLASSES].set(w3.astype(f32))
    w23 = jnp.stack([w2p, w3p]).astype(bf16)          # (2, PAD, PAD) bf16

    bp = jnp.zeros((3, PAD), f32)
    bp = bp.at[0, :H1].set(b1.reshape(-1).astype(f32))
    bp = bp.at[1, :H2].set(b2.reshape(-1).astype(f32))
    bp = bp.at[2, :NUM_CLASSES].set(b3.reshape(-1).astype(f32))
    bp = bp.at[2, NUM_CLASSES:].set(jnp.float32(-1e30))   # baked softmax lane mask
    return w1p, w23, bp


def ann_forward_packed(x, w1p, w23, bp, *, max_block_b=2048):
    """Forward pass given pre-packed parameters."""
    B, D = x.shape

    # Batch tiling: sublane-aligned, >= 2 balanced tiles when B allows (v7x megacore),
    # capped at max_block_b rows (well under VMEM limits on all generations).
    bt = min(max_block_b, max(8, _round_up(pl.cdiv(B, 2), 8)))
    b_pad = _round_up(B, bt)

    xp = x.astype(jnp.bfloat16)
    if b_pad != B:
        xp = jnp.pad(xp, ((0, b_pad - B), (0, 0)))
    grid = (b_pad // bt,)

    cost = pl.CostEstimate(
        flops=2 * b_pad * (D * PAD + 2 * PAD * PAD),
        transcendentals=b_pad * PAD,
        bytes_accessed=(b_pad * D * 2 + b_pad * OUT_PAD * 4
                        + w1p.size * 2 + w23.size * 2 + bp.size * 4),
    )

    kernel = functools.partial(ann_kernel, out_width=OUT_PAD)

    out = pl.pallas_call(
        kernel,
        out_shape=jax.ShapeDtypeStruct((b_pad, OUT_PAD), jnp.float32),
        grid=grid,
        in_specs=[
            pl.BlockSpec((bt, D), lambda i: (i, 0)),           # x: streamed per tile
            pl.BlockSpec((D, PAD), lambda i: (0, 0)),          # W1: VMEM-resident
            pl.BlockSpec((2, PAD, PAD), lambda i: (0, 0, 0)),  # W2|W3: VMEM-resident
            pl.BlockSpec((3, PAD), lambda i: (0, 0)),          # b1|b2|b3: VMEM-resident
        ],
        out_specs=pl.BlockSpec((bt, OUT_PAD), lambda i: (i, 0)),
        compiler_params=pltpu.CompilerParams(
            dimension_semantics=("parallel",),
        ),
        cost_estimate=cost,
    )(xp, w1p, w23, bp)

    return out[:B, :NUM_CLASSES]


def ann_forward(x, w1, b1, w2, b2, w3, b3, *, max_block_b=2048):
    """Convenience wrapper: packs params then runs the kernel (prefer packing once)."""
    packed = pack_params(w1, b1, w2, b2, w3, b3)
    return ann_forward_packed(x, *packed, max_block_b=max_block_b)


def ann_reference(x, w1, b1, w2, b2, w3, b3):
    """Pure-JAX f32 reference for correctness checking."""
    h1 = jnp.maximum(x @ w1 + b1, 0.0)
    h2 = jnp.maximum(h1 @ w2 + b2, 0.0)
    logits = h2 @ w3 + b3
    return jax.nn.softmax(logits, axis=1)


def init_params(key, in_features=IN_FEATURES):
    """Deterministic parameter init (uniform, PyTorch-Linear-style bounds)."""
    def linear(k, d_in, d_out):
        kw, kb = jax.random.split(k)
        bound = 1.0 / jnp.sqrt(jnp.float32(d_in))
        w = jax.random.uniform(kw, (d_in, d_out), jnp.float32, -bound, bound)
        b = jax.random.uniform(kb, (1, d_out), jnp.float32, -bound, bound)
        return w, b

    k1, k2, k3 = jax.random.split(key, 3)
    w1, b1 = linear(k1, in_features, H1)
    w2, b2 = linear(k2, H1, H2)
    w3, b3 = linear(k3, H2, NUM_CLASSES)
    return w1, b1, w2, b2, w3, b3


if __name__ == "__main__":
    key = jax.random.PRNGKey(0)
    k_x, k_p = jax.random.split(key)

    batch, in_features = 8, IN_FEATURES
    x = jax.random.normal(k_x, (batch, in_features), jnp.float32)
    params = init_params(k_p, in_features)

    packed = pack_params(*params)              # one-time packing (hoisted)
    out = ann_forward_packed(x, *packed)
    out = jax.block_until_ready(out)

    # sanity: shape, row-sums (exact division -> tight), match vs f32 reference
    # (bf16 matmul inputs -> relaxed tolerance).
    assert out.shape == (batch, NUM_CLASSES)
    assert bool(jnp.all(jnp.isfinite(out)))
    assert jnp.allclose(jnp.sum(out, axis=1), 1.0, atol=1e-3)
    ref = ann_reference(x, *params)
    assert jnp.allclose(out, ref, atol=5e-3, rtol=5e-3)

    print("KERNEL_OK")
</pallas_src>

<mosaic_0001>
module attributes {stable_mosaic.version = 11 : i64} {
  func.func @ann_kernel(%arg0: i32, %arg1: memref<8x32xbf16, #tpu.memory_space<vmem>>, %arg2: memref<32x128xbf16, #tpu.memory_space<vmem>>, %arg3: memref<2x128x128xbf16, #tpu.memory_space<vmem>>, %arg4: memref<3x128xf32, #tpu.memory_space<vmem>>, %arg5: memref<8x8xf32, #tpu.memory_space<vmem>>) attributes {dimension_semantics = [#tpu.dimension_semantics<parallel>], iteration_bounds = array<i64: 1>, scalar_prefetch = 0 : i64, scratch_operands = 0 : i64, tpu.core_type = #tpu.core_type<tc>, window_params = [{transform_indices = @transform_0, window_bounds = array<i64: 8, 32>}, {pipeline_mode = #tpu.pipeline_mode<synchronous>, transform_indices = @transform_1, window_bounds = array<i64: 32, 128>}, {pipeline_mode = #tpu.pipeline_mode<synchronous>, transform_indices = @transform_2, window_bounds = array<i64: 2, 128, 128>}, {pipeline_mode = #tpu.pipeline_mode<synchronous>, transform_indices = @transform_3, window_bounds = array<i64: 3, 128>}, {transform_indices = @transform_4, window_bounds = array<i64: 8, 8>}]} {
    %c0 = arith.constant 0 : index
    %c0_0 = arith.constant 0 : index
    %0 = vector.load %arg1[%c0, %c0_0] : memref<8x32xbf16, #tpu.memory_space<vmem>>, vector<8x32xbf16>
    %c0_1 = arith.constant 0 : index
    %c0_2 = arith.constant 0 : index
    %1 = vector.load %arg4[%c0_1, %c0_2] : memref<3x128xf32, #tpu.memory_space<vmem>>, vector<3x128xf32>
    %c0_3 = arith.constant 0 : index
    %c0_4 = arith.constant 0 : index
    %2 = vector.load %arg2[%c0_3, %c0_4] : memref<32x128xbf16, #tpu.memory_space<vmem>>, vector<32x128xbf16>
    %cst = arith.constant dense<0.000000e+00> : vector<8x128xf32>
    %3 = tpu.matmul %0, %2, %cst {dimension_numbers = #tpu.dot_dimension_numbers<[1], [0], [0], [1], [0, 0, 1, 1], [], []>} : vector<8x32xbf16>, vector<32x128xbf16>, vector<8x128xf32> -> vector<8x128xf32>
    %4 = vector.extract_strided_slice %1 {offsets = [0, 0], sizes = [1, 128], strides = [1, 1]} : vector<3x128xf32> to vector<1x128xf32>
    %5 = vector.broadcast %4 : vector<1x128xf32> to vector<8x128xf32>
    %6 = arith.addf %3, %5 : vector<8x128xf32>
    %cst_5 = arith.constant 0.000000e+00 : f32
    %7 = vector.broadcast %cst_5 : f32 to vector<8x128xf32>
    %8 = arith.maximumf %6, %7 : vector<8x128xf32>
    %9 = arith.truncf %8 : vector<8x128xf32> to vector<8x128xbf16>
    %c0_6 = arith.constant 0 : index
    %c0_7 = arith.constant 0 : index
    %c0_8 = arith.constant 0 : index
    %10 = vector.load %arg3[%c0_6, %c0_7, %c0_8] : memref<2x128x128xbf16, #tpu.memory_space<vmem>>, vector<1x128x128xbf16>
    %11 = vector.shape_cast %10 : vector<1x128x128xbf16> to vector<128x128xbf16>
    %cst_9 = arith.constant dense<0.000000e+00> : vector<8x128xf32>
    %12 = tpu.matmul %9, %11, %cst_9 {dimension_numbers = #tpu.dot_dimension_numbers<[1], [0], [0], [1], [0, 0, 1, 1], [], []>} : vector<8x128xbf16>, vector<128x128xbf16>, vector<8x128xf32> -> vector<8x128xf32>
    %13 = vector.extract_strided_slice %1 {offsets = [1, 0], sizes = [1, 128], strides = [1, 1]} : vector<3x128xf32> to vector<1x128xf32>
    %14 = vector.broadcast %13 : vector<1x128xf32> to vector<8x128xf32>
    %15 = arith.addf %12, %14 : vector<8x128xf32>
    %cst_10 = arith.constant 0.000000e+00 : f32
    %16 = vector.broadcast %cst_10 : f32 to vector<8x128xf32>
    %17 = arith.maximumf %15, %16 : vector<8x128xf32>
    %18 = arith.truncf %17 : vector<8x128xf32> to vector<8x128xbf16>
    %c1 = arith.constant 1 : index
    %c0_11 = arith.constant 0 : index
    %c0_12 = arith.constant 0 : index
    %19 = vector.load %arg3[%c1, %c0_11, %c0_12] : memref<2x128x128xbf16, #tpu.memory_space<vmem>>, vector<1x128x128xbf16>
    %20 = vector.shape_cast %19 : vector<1x128x128xbf16> to vector<128x128xbf16>
    %cst_13 = arith.constant dense<0.000000e+00> : vector<8x128xf32>
    %21 = tpu.matmul %18, %20, %cst_13 {dimension_numbers = #tpu.dot_dimension_numbers<[1], [0], [0], [1], [0, 0, 1, 1], [], []>} : vector<8x128xbf16>, vector<128x128xbf16>, vector<8x128xf32> -> vector<8x128xf32>
    %22 = vector.extract_strided_slice %1 {offsets = [2, 0], sizes = [1, 128], strides = [1, 1]} : vector<3x128xf32> to vector<1x128xf32>
    %23 = vector.broadcast %22 : vector<1x128xf32> to vector<8x128xf32>
    %24 = arith.addf %21, %23 : vector<8x128xf32>
    %cst_14 = arith.constant dense<0xFF800000> : vector<8xf32>
    %25 = vector.multi_reduction <maximumf>, %24, %cst_14 [1] : vector<8x128xf32> to vector<8xf32>
    %26 = vector.shape_cast %25 : vector<8xf32> to vector<8x1xf32>
    %27 = vector.broadcast %26 : vector<8x1xf32> to vector<8x128xf32>
    %28 = arith.subf %24, %27 : vector<8x128xf32>
    %29 = math.exp %28 : vector<8x128xf32>
    %cst_15 = arith.constant dense<0.000000e+00> : vector<8xf32>
    %30 = vector.multi_reduction <add>, %29, %cst_15 [1] : vector<8x128xf32> to vector<8xf32>
    %31 = vector.shape_cast %30 : vector<8xf32> to vector<8x1xf32>
    %32 = vector.broadcast %31 : vector<8x1xf32> to vector<8x128xf32>
    %33 = arith.divf %29, %32 : vector<8x128xf32>
    %34 = vector.extract_strided_slice %33 {offsets = [0, 0], sizes = [8, 8], strides = [1, 1]} : vector<8x128xf32> to vector<8x8xf32>
    %c0_16 = arith.constant 0 : index
    %c0_17 = arith.constant 0 : index
    %35 = vector.load %arg5[%c0_16, %c0_17] : memref<8x8xf32, #tpu.memory_space<vmem>>, vector<8x8xf32>
    tpu.vector_store %arg5[%c0_16, %c0_17], %34 {strides = array<i32>} : memref<8x8xf32, #tpu.memory_space<vmem>>, vector<8x8xf32>,
    return
  }
  func.func @transform_0(%arg0: i32) -> (i32, i32) {
    %c0_i32 = arith.constant 0 : i32
    %c0_i32_0 = arith.constant 0 : i32
    return %arg0, %c0_i32 : i32, i32
  }
  func.func @transform_1(%arg0: i32) -> (i32, i32) {
    %c0_i32 = arith.constant 0 : i32
    %c0_i32_0 = arith.constant 0 : i32
    %c0_i32_1 = arith.constant 0 : i32
    return %c0_i32, %c0_i32_0 : i32, i32
  }
  func.func @transform_2(%arg0: i32) -> (i32, i32, i32) {
    %c0_i32 = arith.constant 0 : i32
    %c0_i32_0 = arith.constant 0 : i32
    %c0_i32_1 = arith.constant 0 : i32
    %c0_i32_2 = arith.constant 0 : i32
    return %c0_i32, %c0_i32_0, %c0_i32_1 : i32, i32, i32
  }
  func.func @transform_3(%arg0: i32) -> (i32, i32) {
    %c0_i32 = arith.constant 0 : i32
    %c0_i32_0 = arith.constant 0 : i32
    %c0_i32_1 = arith.constant 0 : i32
    return %c0_i32, %c0_i32_0 : i32, i32
  }
  func.func @transform_4(%arg0: i32) -> (i32, i32) {
    %c0_i32 = arith.constant 0 : i32
    %c0_i32_0 = arith.constant 0 : i32
    return %arg0, %c0_i32 : i32, i32
  }
}

</mosaic_0001>

<bundles_post_ra>
// kernel: tpu_custom_call.1
= control target key start
LH: loop header
LB: loop body
LE: loop exit
PB: predicated region body
PF: predicated region fallthrough
CT: control target
= control target key end

     0   :  { %9 = vsyncpa [#allocation3], 0  ;;  %s698_s0 = inlined_call_operand.hbm [shape: bf16[8,32], index: 0, kind: input, shape index: {}]   ;;  %s699_s1 = inlined_call_operand.hbm [shape: bf16[32,128], index: 1, kind: input, shape index: {}]   ;;  %s700_s2 = inlined_call_operand.hbm [shape: bf16[2,128,128], index: 2, kind: input, shape index: {}]   ;;  %s701_s3 = inlined_call_operand.vmem [shape: f32[3,128], index: 3, kind: input, shape index: {}]   ;;  %s702_s4 = inlined_call_operand.hbm [shape: f32[8,8], index: 4, kind: output, shape index: {}]  }
   0x1   :  { %10 = vsyncpa [#allocation6], 0 }
   0x2   :  { %11 = vsyncpa [#allocation4], 0  ;;  %s584_s15 = smov [#allocation5]   ;;  %s490_s19 = scalar_lea.hbm %s699_s1, 256 }
   0x3   :  { %s27_s16 = sshll.u32 %s584_s15, 4  ;;  %p491_p0 = scmp.ne.s32.totalorder %s699_s1, %s490_s19  ;;  %s28_s16 = int_to_ptr.vmem [resolvable:$true] %s27_s16 }
   0x4   :  { %p494_p1 = scmp.lt.u32.totalorder %s490_s19, %s699_s1 }
   0x6   :  { %p496_p2 = pnand %p494_p1, %p491_p0 }
   0x8   :  { %499 = shalt.err (!%p496_p2)
}
   0x9   :  { %s500_s24 = scalar_lea.vmem %s28_s16, 256  ;;  %p505_p4 = scmp.lt.s32.totalorder %s28_s16, %s28_s16 }
   0xa   :  { %p501_p3 = scmp.ne.s32.totalorder %s28_s16, %s500_s24  ;;  %p506_p5 = scmp.lt.s32.totalorder %s500_s24, %s500_s24 }
   0xc   :  { %p507_p6 = por %p506_p5, %p505_p4 }
   0xe   :  { %p508_p7 = pnand %p507_p6, %p501_p3 }
  0x10   :  { %511 = shalt.err (!%p508_p7)
}
  0x11   :  { %s585_s25 = smov 64   ;;  %s586_s26 = smov 4  }
  0x12   :  { %33 = dma.hbm_to_vmem [thread:$0]  %s699_s1, 256, %s28_s16, [#allocation6], %s585_s25, %s585_s25, %s586_s26  }
  0x13   :  { %s587_s29 = smov [#allocation2]   ;;  %s588_s5 = smov [#allocation7]  }
  0x14   :  { %s18_s30 = sshll.u32 %s587_s29, 4  ;;  %s39_s6 = sshll.u32 %s588_s5, 4  ;;  %s19_s30 = int_to_ptr.vmem [resolvable:$true] %s18_s30  ;;  %s40_s6 = int_to_ptr.vmem [resolvable:$true] %s39_s6 }
  0x15   :  { %s512_s9 = scalar_lea.hbm %s698_s0, 64 }
  0x16   :  { %p513_p8 = scmp.ne.s32.totalorder %s698_s0, %s512_s9  ;;  %p516_p9 = scmp.lt.u32.totalorder %s512_s9, %s698_s0 }
  0x18   :  { %p518_p10 = pnand %p516_p9, %p513_p8 }
  0x1a   :  { %521 = shalt.err (!%p518_p10)
}
  0x1b   :  { %s522_s1 = scalar_lea.vmem %s19_s30, 64  ;;  %p527_p12 = scmp.lt.s32.totalorder %s19_s30, %s19_s30 }
  0x1c   :  { %p523_p11 = scmp.ne.s32.totalorder %s19_s30, %s522_s1  ;;  %p528_p13 = scmp.lt.s32.totalorder %s522_s1, %s522_s1 }
  0x1e   :  { %p529_p0 = por %p528_p13, %p527_p12 }
  0x20   :  { %p530_p1 = pnand %p529_p0, %p523_p11 }
  0x22   :  { %533 = shalt.err (!%p530_p1)
}
  0x23   :  { %21 = dma.hbm_to_vmem [thread:$0]  %s698_s0, 64, %s19_s30, [#allocation3]  }
  0x24   :  { %s534_s18 = scalar_lea.hbm %s700_s2, 2048 }
  0x25   :  { %p535_p2 = scmp.ne.s32.totalorder %s700_s2, %s534_s18  ;;  %p538_p3 = scmp.lt.u32.totalorder %s534_s18, %s700_s2 }
  0x27   :  { %p540_p4 = pnand %p538_p3, %p535_p2 }
  0x29   :  { %543 = shalt.err (!%p540_p4)
}
  0x2a   :  { %s544_s23 = scalar_lea.vmem %s40_s6, 2048  ;;  %p549_p6 = scmp.lt.s32.totalorder %s40_s6, %s40_s6 }
  0x2b   :  { %p545_p5 = scmp.ne.s32.totalorder %s40_s6, %s544_s23  ;;  %p550_p7 = scmp.lt.s32.totalorder %s544_s23, %s544_s23 }
  0x2d   :  { %p551_p8 = por %p550_p7, %p549_p6 }
  0x2f   :  { %p552_p9 = pnand %p551_p8, %p545_p5 }
  0x31   :  { %555 = shalt.err (!%p552_p9)
}
  0x32   :  { %45 = dma.hbm_to_vmem [thread:$0]  %s700_s2, 2048, %s40_s6, [#allocation6], %s585_s25, %s585_s25, %s586_s26  }
  0x33   :  { %578 = dma.done.wait [#allocation3], 64  }
  0x34   :  { %579 = vsyncadd [#allocation3], 4294967232 }
  0x35   :  { %580 = dma.done.wait [#allocation6], 2304  }
  0x36   :  { %581 = vsyncadd [#allocation6], 4294964992  ;;  %v589_v0 = vmov 0.0   ;;  %vm590_vm0 = vmmov 0   ;;  %v468_v1 = vld [vmem:[#allocation5] sm:$0xff]   ;;  %v469_v2 = vld [vmem:[#allocation5 + $0x8] sm:$0xff]   ;;  %v64_v18 = vlaneseq }
  0x37   :  { %412 = vmatprep.subr.bf16.mxu0 %v589_v0  ;;  %416 = vmatprep.mubr.msk.bf16.mxu0 %vm590_vm0, %v589_v0  ;;  %v470_v3 = vld [vmem:[#allocation7] sm:$0xff]   ;;  %vm80_vm1 = vcmask 261120   ;;  %v471_v4 = vld [vmem:[#allocation7 + $0x8] sm:$0xff]   ;;  %v472_v6 = vld [vmem:[#allocation7 + $0x10] sm:$0xff]   ;;  %vm354_vm2 = vcmask 64512  }
  0x38   :  { %420 = vmatprep.subr.bf16.mxu1 %v589_v0  ;;  %436 = vmatprep.mubr.msk.bf16.mxu1 %vm590_vm0, %v589_v0  ;;  %v58_v5 = vld [vmem:[#allocation2] sm:$0xf]  ;;  %v473_v7 = vld [vmem:[#allocation7 + $0x18] sm:$0xff]   ;;  %v474_v8 = vld [vmem:[#allocation7 + $0x20] sm:$0xff]   ;;  %v65_v19 = vshrl.u32 %v64_v18, 7 }
  0x39   :  { %413 = vmatpush3.bf16.msra.mxu0 %v468_v1  ;;  %421 = vmatpush3.bf16.msra.mxu1 %v470_v3  ;;  %v475_v9 = vld [vmem:[#allocation7 + $0x28] sm:$0xff]   ;;  %v476_v10 = vld [vmem:[#allocation7 + $0x30] sm:$0xff]   ;;  %v477_v11 = vld [vmem:[#allocation7 + $0x38] sm:$0xff]  }
  0x3a   :  { %414 = vmatprep.subr.bf16.mxu0 %v589_v0  ;;  %422 = vmatprep.subr.bf16.mxu1 %v589_v0  ;;  %v478_v12 = vld [vmem:[#allocation7 + $0x40] sm:$0xff]   ;;  %v479_v13 = vld [vmem:[#allocation7 + $0x48] sm:$0xff]   ;;  %v480_v14 = vld [vmem:[#allocation7 + $0x50] sm:$0xff]   ;;  %v66_v20 = vsub.s32 0, %v65_v19  ;;  %v144_v32 = vsub.s32 1, %v65_v19  ;;  %v255_v41 = vsub.s32 2, %v65_v19 }
  0x3b   :  { %v481_v15 = vld [vmem:[#allocation7 + $0x58] sm:$0xff]   ;;  %v482_v16 = vld [vmem:[#allocation7 + $0x60] sm:$0xff]   ;;  %v483_v17 = vld [vmem:[#allocation7 + $0x68] sm:$0xff]  }
  0x3c   :  { %v59_v21 = vld [vmem:[%s701_s3] sm:$0x7]  ;;  %v484_v30 = vld [vmem:[#allocation7 + $0x70] sm:$0xff]   ;;  %v485_v31 = vld [vmem:[#allocation7 + $0x78] sm:$0xff]   ;;  %s591_s3 = smov [#allocation8]  }
  0x3d   :  { %415 = vmatpush3.bf16.msra.mxu0 %v469_v2  ;;  %423 = vmatpush3.bf16.msra.mxu1 %v471_v4  ;;  %v67_v22 = vrot.slane %v59_v21, %v66_v20  ;;  %v145_v33 = vrot.slane %v59_v21, %v144_v32  ;;  %v256_v42 = vrot.slane %v59_v21, %v255_v41  ;;  %s362_s26 = sshll.u32 %s591_s3, 4  ;;  %s363_s26 = int_to_ptr.vmem [resolvable:$true] %s362_s26 }
  0x3e   :  { %440 = vmatprep.subr.bf16.mxu0 %v589_v0  ;;  %424 = vmatprep.subr.bf16.mxu1 %v589_v0  ;;  %s556_s27 = scalar_lea.vmem %s363_s26, 128  ;;  %p561_p11 = scmp.lt.s32.totalorder %s363_s26, %s363_s26 }
  0x3f   :  { %p557_p10 = scmp.ne.s32.totalorder %s363_s26, %s556_s27  ;;  %p562_p12 = scmp.lt.s32.totalorder %s556_s27, %s556_s27 }
  0x40   :  { %417 = vmatmul.mubr.msk.bf16.vlgmr.msra.gmra.mrb[0].mxu0 %vm80_vm1, %v58_v5 }
  0x41   :  { %456 = vmatprep.mubr.msk.bf16.mxu0 %vm590_vm0, %v589_v0  ;;  %425 = vmatpush3.bf16.msra.mxu1 %v472_v6  ;;  %p563_p13 = por %p562_p12, %p561_p11 }
  0x42   :  { %426 = vmatprep.subr.bf16.mxu1 %v589_v0  ;;  %441 = vmatpush3.bf16.msra.mxu0 %v478_v12 }
  0x43   :  { %442 = vmatprep.subr.bf16.mxu0 %v589_v0  ;;  %p564_p0 = pnand %p563_p13, %p557_p10 }
  0x45   :  { %427 = vmatpush3.bf16.msra.mxu1 %v473_v7 }
  0x46   :  { %428 = vmatprep.subr.bf16.mxu1 %v589_v0  ;;  %443 = vmatpush3.bf16.msra.mxu0 %v479_v13 }
  0x47   :  { %444 = vmatprep.subr.bf16.mxu0 %v589_v0 }
  0x49   :  { %429 = vmatpush3.bf16.msra.mxu1 %v474_v8 }
  0x4a   :  { %430 = vmatprep.subr.bf16.mxu1 %v589_v0  ;;  %445 = vmatpush3.bf16.msra.mxu0 %v480_v14 }
  0x4b   :  { %446 = vmatprep.subr.bf16.mxu0 %v589_v0 }
  0x4d   :  { %431 = vmatpush3.bf16.msra.mxu1 %v475_v9 }
  0x4e   :  { %432 = vmatprep.subr.bf16.mxu1 %v589_v0  ;;  %447 = vmatpush3.bf16.msra.mxu0 %v481_v15 }
  0x4f   :  { %448 = vmatprep.subr.bf16.mxu0 %v589_v0 }
  0x51   :  { %433 = vmatpush3.bf16.msra.mxu1 %v476_v10 }
  0x52   :  { %434 = vmatprep.subr.bf16.mxu1 %v589_v0  ;;  %449 = vmatpush3.bf16.msra.mxu0 %v482_v16 }
  0x53   :  { %450 = vmatprep.subr.bf16.mxu0 %v589_v0 }
  0x55   :  { %435 = vmatpush3.bf16.msra.mxu1 %v477_v11 }
  0x56   :  { %451 = vmatpush3.bf16.msra.mxu0 %v483_v17 }
  0x57   :  { %452 = vmatprep.subr.bf16.mxu0 %v589_v0 }
  0x5a   :  { %453 = vmatpush3.bf16.msra.mxu0 %v484_v30 }
  0x5b   :  { %454 = vmatprep.subr.bf16.mxu0 %v589_v0 }
  0x5e   :  { %455 = vmatpush3.bf16.msra.mxu0 %v485_v31 }
 0x113   :  { %v118_v23 = vpop.f32.mrb[0].mxu0 }
 0x114   :  { %v119_v24 = vadd.f32 %v118_v23, %v67_v22  ;;  %v418_v25 = vpop.f32.mrb[1].mxu0 }
 0x115   :  { %v121_v26 = vpop.f32.mrb[2].mxu0 }
 0x116   :  { %v124_v27 = vmax.f32 %v119_v24, 0.0  ;;  %v419_v28 = vpop.f32.mrb[3].mxu0 }
 0x118   :  { %v125_v29 = vpack.c.bf16 %v124_v27, %v124_v27 }
 0x11a   :  { %437 = vmatmul.mubr.bf16.vlgmr.msra.gmra.mrb[0].mxu1 %v125_v29 }
 0x1ed   :  { %v228_v34 = vpop.f32.mrb[0].mxu1 }
 0x1ee   :  { %v229_v35 = vadd.f32 %v228_v34, %v145_v33  ;;  %v438_v36 = vpop.f32.mrb[1].mxu1 }
 0x1ef   :  { %v231_v37 = vpop.f32.mrb[2].mxu1 }
 0x1f0   :  { %v234_v38 = vmax.f32 %v229_v35, 0.0  ;;  %v439_v39 = vpop.f32.mrb[3].mxu1 }
 0x1f2   :  { %v235_v40 = vpack.c.bf16 %v234_v38, %v234_v38 }
 0x1f4   :  { %457 = vmatmul.mubr.bf16.vlgmr.msra.gmra.mrb[4].mxu0 %v235_v40 }
 0x2c7   :  { %v339_v43 = vpop.f32.mrb[4].mxu0 }
 0x2c8   :  { %v340_v44 = vadd.f32 %v339_v43, %v256_v42  ;;  %v458_v45 = vpop.f32.mrb[5].mxu0 }
 0x2c9   :  { %v342_v46 = vpop.f32.mrb[6].mxu0 }
 0x2ca   :  { %345 = vmax.xlane.f32.xlu0 %v340_v44  ;;  %v459_v47 = vpop.f32.mrb[7].mxu0 }
 0x357   :  { %v346_v48 = vpop.xlane.xlu0 %345 }
 0x358   :  { %v347_v49 = vsub.f32 %v340_v44, %v346_v48 }
 0x35a   :  { %v348_v50 = vmul.f32 1.442695, %v347_v49 }
 0x35c   :  { %486 = vpow2.f32 %v348_v50 }
 0x366   :  { %v487_v51 = vpop.eup %486 }
 0x367   :  { %350 = vadd.xlane.f32.xlu0 %v487_v51 }
 0x3f4   :  { %v351_v52 = vpop.xlane.xlu0 %350 }
 0x3f5   :  { %488 = vrcp.f32 %v351_v52 }
 0x3ff   :  { %v489_v53 = vpop.eup %488 }
 0x400   :  { %v353_v54 = vmul.f32 %v489_v53, %v487_v51 }
 0x402   :  { %355 = vst.msk [vmem:[#allocation8] sm:$0xff] %vm354_vm2, %v353_v54 }
 0x403   :  { %567 = shalt.err (!%p564_p0)
}
 0x404   :  { %s568_s30 = scalar_lea.hbm %s702_s4, 128 }
 0x405   :  { %p569_p1 = scmp.ne.s32.totalorder %s702_s4, %s568_s30  ;;  %p572_p2 = scmp.lt.u32.totalorder %s568_s30, %s702_s4 }
 0x407   :  { %p574_p3 = pnand %p572_p2, %p569_p1 }
 0x409   :  { %577 = shalt.err (!%p574_p3)
}
 0x40a   :  { %365 = dma.vmem_to_hbm [thread:$0]  %s363_s26, 128, %s702_s4, [#allocation4]  }
 0x40b   :  { %582 = dma.done.wait [#allocation4], 128  }
 0x40c   :  { %583 = vsyncadd [#allocation4], 4294967168 }
 0x40d   :  { %369 = vsyncpa [#allocation3], 1 }
 0x40e   :  { %370 = vsyncpa [#allocation6], 1 }
 0x40f   :  { %371 = vsyncpa [#allocation4], 1 }

</bundles_post_ra>
